<compile_context>
chip_gen: v7x
topology: tpu7x:2x2x1
jax: 0.10.0
libtpu: 0.0.40
codegen_flags: <defaults>
</compile_context>

<pallas_src>
import jax
import jax.numpy as jnp
from jax.experimental import pallas as pl
from jax.experimental.pallas import tpu as pltpu


def _round_up(x: int, m: int) -> int:
    return ((x + m - 1) // m) * m


def _cdiv(a: int, b: int) -> int:
    return (a + b - 1) // b


# ----------------------------- parameter setup (glue) -----------------------------

def hann_window(win_length: int) -> jnp.ndarray:
    # torch.hann_window(win_length, periodic=True)
    n = jnp.arange(win_length, dtype=jnp.float32)
    return 0.5 - 0.5 * jnp.cos(2.0 * jnp.pi * n / win_length)


def dft_matrices(n_fft: int, win_length: int):
    """Windowed one-sided DFT matrices: (n_fft, n_freqs) for real and imag parts."""
    n_freqs = n_fft // 2 + 1
    win = hann_window(win_length)
    # torch.stft pads a shorter window to n_fft, centered
    left = (n_fft - win_length) // 2
    win_full = jnp.zeros((n_fft,), jnp.float32).at[left:left + win_length].set(win)
    k = jnp.arange(n_fft, dtype=jnp.float32)[:, None]        # sample index
    f = jnp.arange(n_freqs, dtype=jnp.float32)[None, :]      # frequency bin
    ang = 2.0 * jnp.pi * k * f / n_fft
    cos_m = (jnp.cos(ang) * win_full[:, None]).astype(jnp.float32)   # real part
    sin_m = (-jnp.sin(ang) * win_full[:, None]).astype(jnp.float32)  # imag part
    return cos_m, sin_m


def mel_filterbank(n_freqs: int, f_min: float, f_max: float, n_mels: int,
                   sample_rate: int) -> jnp.ndarray:
    """torchaudio.functional.melscale_fbanks(norm=None, mel_scale='htk') -> (n_freqs, n_mels)."""
    all_freqs = jnp.linspace(0.0, sample_rate / 2.0, n_freqs)
    m_min = 2595.0 * jnp.log10(1.0 + f_min / 700.0)
    m_max = 2595.0 * jnp.log10(1.0 + f_max / 700.0)
    m_pts = jnp.linspace(m_min, m_max, n_mels + 2)
    f_pts = 700.0 * (10.0 ** (m_pts / 2595.0) - 1.0)
    f_diff = f_pts[1:] - f_pts[:-1]                               # (n_mels+1,)
    slopes = f_pts[None, :] - all_freqs[:, None]                  # (n_freqs, n_mels+2)
    down = -slopes[:, :-2] / f_diff[:-1]
    up = slopes[:, 2:] / f_diff[1:]
    fb = jnp.maximum(0.0, jnp.minimum(down, up))
    return fb.astype(jnp.float32)


# --------------------------------- Pallas kernel ----------------------------------

def wav_to_mel_kernel(cur_ref, nxt_ref, wtop_ref, wbot_ref, fb_ref, out_ref):
    """One tm-frame tile: chunked DFT matmuls + |.|^2 + mel matmul + clamp/log2."""
    nf_p = fb_ref.shape[0]                       # padded n_freqs (multiple of 128)
    cur = cur_ref[0]                             # (tm, hop): chunk j  (top half of frame j)
    nxt = nxt_ref[0]                             # (8, hop): first chunks of the next tile
    # chunk j+1 (bottom half of frame j): shift rows up by one, append next tile's chunk 0
    bot = jnp.concatenate([cur[1:, :], nxt[0:1, :]], axis=0)     # (tm, hop)
    # Fused [re | im] = top @ W_top + bot @ W_bot ; bf16 operands, f32 MXU accumulation.
    spec = (jnp.dot(cur.astype(jnp.bfloat16), wtop_ref[...],
                    preferred_element_type=jnp.float32)
            + jnp.dot(bot.astype(jnp.bfloat16), wbot_ref[...],
                      preferred_element_type=jnp.float32))        # (tm, 2*nf_p)
    re = spec[:, :nf_p]                                           # lane-tile-aligned slices
    im = spec[:, nf_p:]
    power = re * re + im * im                                     # |STFT|^2, (tm, nf_p)
    mel = jnp.dot(power.astype(jnp.bfloat16), fb_ref[...],
                  preferred_element_type=jnp.float32)             # (tm, n_mels_p)
    out_ref[0] = jnp.log2(jnp.maximum(mel, 1e-5))


def log_mel_pallas(x, w_top, w_bot, fb_p, *, hop, n_fft, n_frames, tm=1024):
    """x: (B, T) noised waveform -> (B, n_tiles*tm, n_mels_p) log2-mel (caller slices)."""
    assert n_fft == 2 * hop, "chunked kernel assumes 50% frame overlap (n_fft == 2*hop)"
    B, T = x.shape
    pad = n_fft // 2
    nf_p2 = w_top.shape[1]                       # 2 * padded n_freqs
    n_freqs_p, n_mels_p = fb_p.shape

    # Balanced row tiling: tm as large as useful (default 1024), multiple of 8, and at
    # least 2 grid steps overall so v7x's two TensorCores both get work.
    n_tiles = max(1, _cdiv(n_frames, tm))
    if B == 1 and n_frames >= 16:
        n_tiles = max(n_tiles, 2)
    tm = _round_up(_cdiv(n_frames, n_tiles), 8)
    n_tiles = _cdiv(n_frames, tm)
    tm8 = tm // 8

    # Chunked, reflect-padded waveform built in ONE materialization:
    #   [reflect-left (pad) | x | reflect-right (pad) | zeros]
    # sized so every chunk row any BlockSpec touches is in-bounds
    # ("cur" blocks need n_tiles*tm rows, the "next" peek needs 8 more).
    rows = n_tiles * tm + 8
    need = rows * hop
    left = jnp.flip(x[:, 1:pad + 1], axis=1)              # x[pad], ..., x[1]
    right = jnp.flip(x[:, T - 1 - pad:T - 1], axis=1)     # x[T-2], ..., x[T-1-pad]
    tail = jnp.zeros((B, need - (T + 2 * pad)), x.dtype)
    chunks = jnp.concatenate([left, x, right, tail], axis=1).reshape(B, rows, hop)

    flops = (2 * 2 * B * n_tiles * tm * hop * nf_p2               # two chunked DFT matmuls
             + 3 * B * n_tiles * tm * n_freqs_p                   # |.|^2
             + 2 * B * n_tiles * tm * n_freqs_p * n_mels_p)       # mel matmul
    bytes_accessed = (4 * B * rows * hop                          # chunks (read once + 8-row peeks)
                      + 4 * B * n_tiles * 8 * hop
                      + 2 * (w_top.size + w_bot.size + fb_p.size)
                      + 4 * B * n_tiles * tm * n_mels_p)          # output

    out = pl.pallas_call(
        wav_to_mel_kernel,
        out_shape=jax.ShapeDtypeStruct((B, n_tiles * tm, n_mels_p), jnp.float32),
        grid_spec=pltpu.PrefetchScalarGridSpec(
            num_scalar_prefetch=0,
            grid=(B, n_tiles),
            in_specs=[
                # current tile's chunks (top halves of its frames)
                pl.BlockSpec((1, tm, hop), lambda b, i: (b, i, 0)),
                # first 8 chunks of the NEXT tile (row 0 is the last frame's bottom half)
                pl.BlockSpec((1, 8, hop), lambda b, i: (b, (i + 1) * tm8, 0)),
                pl.BlockSpec((hop, nf_p2), lambda b, i: (0, 0)),            # W_top (bf16)
                pl.BlockSpec((hop, nf_p2), lambda b, i: (0, 0)),            # W_bot (bf16)
                pl.BlockSpec((n_freqs_p, n_mels_p), lambda b, i: (0, 0)),   # mel fb (bf16)
            ],
            out_specs=pl.BlockSpec((1, tm, n_mels_p), lambda b, i: (b, i, 0)),
        ),
        compiler_params=pltpu.CompilerParams(
            dimension_semantics=("parallel", "parallel")),
        cost_estimate=pl.CostEstimate(
            flops=flops,
            transcendentals=B * n_tiles * tm * n_mels_p,
            bytes_accessed=bytes_accessed),
    )(chunks, chunks, w_top, w_bot, fb_p)
    return out


# --------------------------------- module wrapper ----------------------------------

class WavToMel:
    def __init__(self, config, noise_scale: float = 1e-4):
        pp = config["preprocessing"]
        self.noise_scale = noise_scale
        self.sample_rate = pp["sampling_rate"]
        self.win_length = int(pp["sampling_rate"] * pp["win_time"])
        self.hop_length = int(pp["sampling_rate"] * pp["stride_time"])
        self.n_fft = pp["n_fft"]
        self.n_mels = pp["mel_filter_size"]
        self.n_freqs = self.n_fft // 2 + 1
        # TODO(synk): only the 50%-overlap case (n_fft == 2*hop) uses the chunked kernel;
        # other hop ratios would need a frames-gather fallback path.
        assert self.n_fft == 2 * self.hop_length, "kernel requires n_fft == 2 * hop_length"

        cos_m, sin_m = dft_matrices(self.n_fft, self.win_length)
        fb = mel_filterbank(self.n_freqs, 0.0, self.sample_rate / 2.0,
                            self.n_mels, self.sample_rate)

        # Lane-dense padded constants: fused [cos | sin], freq/mel dims padded to 128.
        self.n_freqs_p = _round_up(self.n_freqs, 128)
        self.n_mels_p = _round_up(self.n_mels, 128)
        w = jnp.zeros((self.n_fft, 2 * self.n_freqs_p), jnp.float32)
        w = w.at[:, :self.n_freqs].set(cos_m)
        w = w.at[:, self.n_freqs_p:self.n_freqs_p + self.n_freqs].set(sin_m)
        self.w_full_f32 = w                                        # kept for reference checks
        self.w_top = w[:self.hop_length].astype(jnp.bfloat16)      # bf16 MXU operands
        self.w_bot = w[self.hop_length:].astype(jnp.bfloat16)
        fbp = jnp.zeros((self.n_freqs_p, self.n_mels_p), jnp.float32)
        fbp = fbp.at[:self.n_freqs, :self.n_mels].set(fb)
        self.fb_p_f32 = fbp
        self.fb_p = fbp.astype(jnp.bfloat16)

    def __call__(self, inputs, input_lengths, *, key):
        B, T = inputs.shape
        # TODO(synk): the noise could be drawn in-kernel (pltpu.prng_seed + stateful_normal
        # via a scalar-prefetch seed) to save two waveform-sized HBM passes, but the
        # reflect pad and the 50%-overlapping frames must see ONE consistent noise stream
        # (torch.randn_like semantics), so it stays in the wrapper.
        noise = jax.random.normal(key, inputs.shape, dtype=inputs.dtype) * self.noise_scale
        x = (inputs + noise).astype(jnp.float32)

        n_frames = 1 + T // self.hop_length                        # torch.stft, center=True
        log_mel = log_mel_pallas(x, self.w_top, self.w_bot, self.fb_p,
                                 hop=self.hop_length, n_fft=self.n_fft, n_frames=n_frames)
        # TODO(synk): the pad-lane slice could be removed by packing two frames' 64 mels
        # per 128-lane output row in-kernel (second-order; output is the smallest tensor).
        log_mel = log_mel[:, :n_frames, :self.n_mels]              # (B, T', D)

        # torch: lengths // (T / T') uses float division; exact-integer equivalent below
        # (may differ by one frame exactly at float-rounding boundaries).
        out_lengths = (input_lengths.astype(jnp.int32) * n_frames) // T
        return log_mel, out_lengths


# ------------------------------------- main ----------------------------------------

if __name__ == "__main__":
    config = {
        "preprocessing": {
            "sampling_rate": 1600,
            "win_time": 0.08,     # win_length = 128
            "stride_time": 0.04,  # hop_length = 64
            "n_fft": 128,
            "mel_filter_size": 64,
        }
    }
    B, T = 2, 512

    key = jax.random.PRNGKey(0)
    k_wav, k_noise = jax.random.split(key)
    inputs = jax.random.uniform(k_wav, (B, T), dtype=jnp.float32, minval=-1.0, maxval=1.0)
    input_lengths = jnp.array([T, T - 100], dtype=jnp.int32)

    model = WavToMel(config, noise_scale=1e-4)
    log_mel, out_lengths = model(inputs, input_lengths, key=k_noise)
    log_mel = jax.block_until_ready(log_mel)
    out_lengths = jax.block_until_ready(out_lengths)

    # Pure-JAX reference (explicit frame gather) with the same bf16 operand quantization
    # and f32 accumulation, so the comparison is apples-to-apples with the MXU path.
    def q(a):
        return a.astype(jnp.bfloat16).astype(jnp.float32)

    noise = jax.random.normal(k_noise, inputs.shape, dtype=inputs.dtype) * 1e-4
    x = inputs + noise
    pad = model.n_fft // 2
    xp = jnp.pad(x, ((0, 0), (pad, pad)), mode="reflect")
    n_frames = 1 + T // model.hop_length
    idx = (jnp.arange(n_frames) * model.hop_length)[:, None] + jnp.arange(model.n_fft)[None, :]
    frames = xp[:, idx].reshape(B * n_frames, model.n_fft)
    hi = jax.lax.Precision.HIGHEST
    spec = jnp.dot(q(frames), q(model.w_full_f32), precision=hi)
    nf_p = model.n_freqs_p
    power = spec[:, :nf_p] ** 2 + spec[:, nf_p:] ** 2
    mel = jnp.dot(q(power), q(model.fb_p_f32), precision=hi)
    ref = jnp.log2(jnp.maximum(mel, 1e-5))[:, :model.n_mels].reshape(B, n_frames, model.n_mels)
    ref_lengths = (input_lengths * n_frames) // T

    assert log_mel.shape == (B, n_frames, model.n_mels), log_mel.shape
    assert out_lengths.shape == (B,), out_lengths.shape
    max_err = float(jnp.max(jnp.abs(log_mel - ref)))
    assert jnp.allclose(log_mel, ref, atol=2e-3, rtol=2e-3), f"mismatch, max abs err {max_err}"
    assert jnp.array_equal(out_lengths, ref_lengths), "length mismatch"

    print("KERNEL_OK")
</pallas_src>

<mosaic_0001>
module attributes {stable_mosaic.version = 11 : i64} {
  func.func @wav_to_mel_kernel(%arg0: i32, %arg1: i32, %arg2: memref<1x16x64xf32, #tpu.memory_space<vmem>>, %arg3: memref<1x8x64xf32, #tpu.memory_space<vmem>>, %arg4: memref<64x256xbf16, #tpu.memory_space<vmem>>, %arg5: memref<64x256xbf16, #tpu.memory_space<vmem>>, %arg6: memref<128x128xbf16, #tpu.memory_space<vmem>>, %arg7: memref<1x16x128xf32, #tpu.memory_space<vmem>>) attributes {dimension_semantics = [#tpu.dimension_semantics<parallel>, #tpu.dimension_semantics<parallel>], iteration_bounds = array<i64: 2, 1>, scalar_prefetch = 0 : i64, scratch_operands = 0 : i64, tpu.core_type = #tpu.core_type<tc>, window_params = [{transform_indices = @transform_0, window_bounds = array<i64: 1, 16, 64>}, {transform_indices = @transform_1, window_bounds = array<i64: 1, 8, 64>}, {pipeline_mode = #tpu.pipeline_mode<synchronous>, transform_indices = @transform_2, window_bounds = array<i64: 64, 256>}, {pipeline_mode = #tpu.pipeline_mode<synchronous>, transform_indices = @transform_3, window_bounds = array<i64: 64, 256>}, {pipeline_mode = #tpu.pipeline_mode<synchronous>, transform_indices = @transform_4, window_bounds = array<i64: 128, 128>}, {transform_indices = @transform_5, window_bounds = array<i64: 1, 16, 128>}]} {
    %c0 = arith.constant 0 : index
    %c0_0 = arith.constant 0 : index
    %c0_1 = arith.constant 0 : index
    %0 = vector.load %arg2[%c0, %c0_0, %c0_1] : memref<1x16x64xf32, #tpu.memory_space<vmem>>, vector<1x16x64xf32>
    %1 = vector.shape_cast %0 : vector<1x16x64xf32> to vector<16x64xf32>
    %c0_2 = arith.constant 0 : index
    %c0_3 = arith.constant 0 : index
    %c0_4 = arith.constant 0 : index
    %2 = vector.load %arg3[%c0_2, %c0_3, %c0_4] : memref<1x8x64xf32, #tpu.memory_space<vmem>>, vector<1x8x64xf32>
    %3 = vector.shape_cast %2 : vector<1x8x64xf32> to vector<8x64xf32>
    %4 = vector.extract_strided_slice %1 {offsets = [1, 0], sizes = [15, 64], strides = [1, 1]} : vector<16x64xf32> to vector<15x64xf32>
    %5 = vector.extract_strided_slice %3 {offsets = [0, 0], sizes = [1, 64], strides = [1, 1]} : vector<8x64xf32> to vector<1x64xf32>
    %6 = tpu.concatenate %4, %5 in 0 : vector<15x64xf32>, vector<1x64xf32> -> vector<16x64xf32>
    %7 = arith.truncf %1 : vector<16x64xf32> to vector<16x64xbf16>
    %c0_5 = arith.constant 0 : index
    %c0_6 = arith.constant 0 : index
    %8 = vector.load %arg4[%c0_5, %c0_6] : memref<64x256xbf16, #tpu.memory_space<vmem>>, vector<64x256xbf16>
    %cst = arith.constant dense<0.000000e+00> : vector<16x256xf32>
    %9 = tpu.matmul %7, %8, %cst {dimension_numbers = #tpu.dot_dimension_numbers<[1], [0], [0], [1], [0, 0, 1, 1], [], []>} : vector<16x64xbf16>, vector<64x256xbf16>, vector<16x256xf32> -> vector<16x256xf32>
    %10 = arith.truncf %6 : vector<16x64xf32> to vector<16x64xbf16>
    %c0_7 = arith.constant 0 : index
    %c0_8 = arith.constant 0 : index
    %11 = vector.load %arg5[%c0_7, %c0_8] : memref<64x256xbf16, #tpu.memory_space<vmem>>, vector<64x256xbf16>
    %cst_9 = arith.constant dense<0.000000e+00> : vector<16x256xf32>
    %12 = tpu.matmul %10, %11, %cst_9 {dimension_numbers = #tpu.dot_dimension_numbers<[1], [0], [0], [1], [0, 0, 1, 1], [], []>} : vector<16x64xbf16>, vector<64x256xbf16>, vector<16x256xf32> -> vector<16x256xf32>
    %13 = arith.addf %9, %12 : vector<16x256xf32>
    %14 = vector.extract_strided_slice %13 {offsets = [0, 0], sizes = [16, 128], strides = [1, 1]} : vector<16x256xf32> to vector<16x128xf32>
    %15 = vector.extract_strided_slice %13 {offsets = [0, 128], sizes = [16, 128], strides = [1, 1]} : vector<16x256xf32> to vector<16x128xf32>
    %16 = arith.mulf %14, %14 : vector<16x128xf32>
    %17 = arith.mulf %15, %15 : vector<16x128xf32>
    %18 = arith.addf %16, %17 : vector<16x128xf32>
    %19 = arith.truncf %18 : vector<16x128xf32> to vector<16x128xbf16>
    %c0_10 = arith.constant 0 : index
    %c0_11 = arith.constant 0 : index
    %20 = vector.load %arg6[%c0_10, %c0_11] : memref<128x128xbf16, #tpu.memory_space<vmem>>, vector<128x128xbf16>
    %cst_12 = arith.constant dense<0.000000e+00> : vector<16x128xf32>
    %21 = tpu.matmul %19, %20, %cst_12 {dimension_numbers = #tpu.dot_dimension_numbers<[1], [0], [0], [1], [0, 0, 1, 1], [], []>} : vector<16x128xbf16>, vector<128x128xbf16>, vector<16x128xf32> -> vector<16x128xf32>
    %cst_13 = arith.constant 9.99999974E-6 : f32
    %22 = vector.broadcast %cst_13 : f32 to vector<16x128xf32>
    %23 = arith.maximumf %21, %22 : vector<16x128xf32>
    %24 = math.log %23 : vector<16x128xf32>
    %cst_14 = arith.constant 2.000000e+00 : f32
    %25 = math.log %cst_14 : f32
    %26 = vector.broadcast %25 : f32 to vector<16x128xf32>
    %27 = arith.divf %24, %26 : vector<16x128xf32>
    %c0_15 = arith.constant 0 : index
    %c0_16 = arith.constant 0 : index
    %c0_17 = arith.constant 0 : index
    %28 = vector.load %arg7[%c0_15, %c0_16, %c0_17] : memref<1x16x128xf32, #tpu.memory_space<vmem>>, vector<1x16x128xf32>
    %29 = vector.shape_cast %28 : vector<1x16x128xf32> to vector<16x128xf32>
    %30 = vector.shape_cast %27 : vector<16x128xf32> to vector<1x16x128xf32>
    tpu.vector_store %arg7[%c0_15, %c0_16, %c0_17], %30 {strides = array<i32>} : memref<1x16x128xf32, #tpu.memory_space<vmem>>, vector<1x16x128xf32>,
    return
  }
  func.func @transform_0(%arg0: i32, %arg1: i32) -> (i32, i32, i32) {
    %c0_i32 = arith.constant 0 : i32
    %c0_i32_0 = arith.constant 0 : i32
    return %arg0, %arg1, %c0_i32 : i32, i32, i32
  }
  func.func @transform_1(%arg0: i32, %arg1: i32) -> (i32, i32, i32) {
    %c1_i32 = arith.constant 1 : i32
    %0 = arith.addi %arg1, %c1_i32 : i32
    %c2_i32 = arith.constant 2 : i32
    %1 = arith.muli %0, %c2_i32 : i32
    %c0_i32 = arith.constant 0 : i32
    %c0_i32_0 = arith.constant 0 : i32
    return %arg0, %1, %c0_i32 : i32, i32, i32
  }
  func.func @transform_2(%arg0: i32, %arg1: i32) -> (i32, i32) {
    %c0_i32 = arith.constant 0 : i32
    %c0_i32_0 = arith.constant 0 : i32
    %c0_i32_1 = arith.constant 0 : i32
    return %c0_i32, %c0_i32_0 : i32, i32
  }
  func.func @transform_3(%arg0: i32, %arg1: i32) -> (i32, i32) {
    %c0_i32 = arith.constant 0 : i32
    %c0_i32_0 = arith.constant 0 : i32
    %c0_i32_1 = arith.constant 0 : i32
    return %c0_i32, %c0_i32_0 : i32, i32
  }
  func.func @transform_4(%arg0: i32, %arg1: i32) -> (i32, i32) {
    %c0_i32 = arith.constant 0 : i32
    %c0_i32_0 = arith.constant 0 : i32
    %c0_i32_1 = arith.constant 0 : i32
    return %c0_i32, %c0_i32_0 : i32, i32
  }
  func.func @transform_5(%arg0: i32, %arg1: i32) -> (i32, i32, i32) {
    %c0_i32 = arith.constant 0 : i32
    %c0_i32_0 = arith.constant 0 : i32
    return %arg0, %arg1, %c0_i32 : i32, i32, i32
  }
}

</mosaic_0001>

<bundles_post_ra>
// kernel: tpu_custom_call.1
= control target key start
LH: loop header
LB: loop body
LE: loop exit
PB: predicated region body
PF: predicated region fallthrough
CT: control target
= control target key end

     0   :  { %s1708_s0 = inlined_call_operand.hbm [shape: f32[2,24,64], index: 0, kind: input, shape index: {}]   ;;  %s1709_s1 = inlined_call_operand.hbm [shape: f32[2,24,64], index: 1, kind: input, shape index: {}]   ;;  %s1710_s2 = inlined_call_operand.hbm [shape: bf16[64,256], index: 2, kind: input, shape index: {}]   ;;  %s1711_s3 = inlined_call_operand.hbm [shape: bf16[64,256], index: 3, kind: input, shape index: {}]   ;;  %s1712_s4 = inlined_call_operand.hbm [shape: bf16[128,128], index: 4, kind: input, shape index: {}]   ;;  %s1713_s5 = inlined_call_operand.hbm [shape: f32[2,16,128], index: 5, kind: output, shape index: {}]  }
   0x1   :  { %1723 = sst [smem:[#allocation19_spill]] %s1708_s0 }
   0x2   :  { %1724 = sst [smem:[#allocation20_spill]] %s1710_s2 }
   0x3   :  { %1725 = sst [smem:[#allocation21_spill]] %s1711_s3 }
   0x4   :  { %1726 = sst [smem:[#allocation22_spill]] %s1712_s4 }
   0x5   :  { %10 = vsyncpa [#allocation3], 0 }
   0x6   :  { %12 = vsyncpa [#allocation3 + $0x1], 0 }
   0x7   :  { %13 = vsyncpa [#allocation6], 0 }
   0x8   :  { %15 = vsyncpa [#allocation6 + $0x1], 0 }
   0x9   :  { %16 = vsyncpa [#allocation9], 0 }
   0xa   :  { %17 = vsyncpa [#allocation4], 0 }
   0xb   :  { %19 = vsyncpa [#allocation4 + $0x1], 0  ;;  %s1366_s18 = smov 0   ;;  %s1368_s19 = smov 0  }
   0xc   :  { %s1370_s20 = smov 0   ;;  %s1372_s21 = smov 0  }
   0xd   :  { %s1374_s22 = smov 0   ;;  %s1376_s23 = smov 0  }
   0xe LB: > { %s1397_s24 = sadd.s32 4294967295, %s1319_s23   ;;  %s854_s25 = sadd.s32 4294967294, %s1319_s23   ;;  %s1319_s23 = sphi %s1376_s23, %s25_s23   ;;  %s1315_s22 = sphi %s1374_s22, %s1760_s22   ;;  %s1311_s21 = sphi %s1372_s21, %s1759_s21   ;;  %s1307_s20 = sphi %s1370_s20, %s1758_s20   ;;  %s1303_s19 = sphi %s1368_s19, %s1757_s19   ;;  %s1299_s18 = sphi %s1366_s18, %s1756_s18  }
   0xf   : > { %p59_p0 = scmp.ne.s32.totalorder %s1303_s19, %s1299_s18  ;;  %p1714_p1 = scmp.eq.s32.totalorder %s1397_s24, 0 }
  0x10   : > { %p186_p3 = scmp.eq.s32.totalorder %s854_s25, 1  ;;  %p855_p5 = scmp.ge.s32.totalorder %s1319_s23, 1 }
  0x11   : > { %p1406_p4 = por %p1714_p1, %p59_p0  ;;  %p193_p7 = scmp.lt.s32.totalorder %s1319_s23, 3 }
  0x12   : > { %p1411_p6 = por %p186_p3, %p59_p0  ;;  %s1321_s29 = smov [#allocation7]  }
  0x13   : > { %s1727_s26 = scalar_select %p1406_p4, 1, 0 }
  0x14   : > { %s1728_s27 = scalar_select %p1411_p6, 1, 0 }
  0x15   : > { %p1416_p8 = pnand %p855_p5, %p193_p7  ;;  %s205_s30 = sshll.u32 %s1321_s29, 4  ;;  %s1420_s30 = int_to_ptr.vmem [resolvable:$true] %s205_s30 }
  0x16   : > { %1729 = sst [smem:[#allocation17_spill]] %s1728_s27  ;;  %s1322_s7 = smov [#allocation8]  }
  0x17   : > { %s1730_s28 = scalar_select %p1416_p8, 1, 0 }
  0x18   : > { %p955_p9 = pneg %p1416_p8  ;;  %s218_s8 = sshll.u32 %s1322_s7, 4  ;;  %s1431_s8 = int_to_ptr.vmem [resolvable:$true] %s218_s8 }
  0x19   : > { %s1323_s9 = smov [#allocation10]   ;;  %s1732_s2 = sld [smem:[#allocation20_spill]] }
  0x1a   : > { %p1427_p11 = pnand %p955_p9, %p1714_p1  ;;  %s1433_s10 = sshll.u32 %s1323_s9, 4  ;;  %s232_s10 = int_to_ptr.vmem [resolvable:$true] %s1433_s10 }
  0x1c   : > { %p1443_p13 = pneg %p1427_p11 }
  0x1f   : > { %s1080_s13 = scalar_lea.hbm %s1732_s2, 1024 }
  0x20   : > { %p1081_p12 = scmp.ne.s32.totalorder %s1732_s2, %s1080_s13  ;;  %p1087_p5 = scmp.lt.u32.totalorder %s1080_s13, %s1732_s2 }
  0x22   : > { %p1083_p0 = pnand %p1443_p13, %p1081_p12 }
  0x24   : > { %p1084_p3 = pneg %p1083_p0 }
  0x26   : > { %p1089_p7 = pnand %p1087_p5, %p1084_p3 }
  0x28   : > { %1092 = shalt.err (!%p1089_p7)
}
  0x29   : > { %s1093_s29 = scalar_lea.vmem %s1420_s30, 1024  ;;  %p1101_p2 = scmp.lt.s32.totalorder %s1420_s30, %s1420_s30 }
  0x2a   : > { %p1094_p9 = scmp.ne.s32.totalorder %s1420_s30, %s1093_s29  ;;  %p1102_p6 = scmp.lt.s32.totalorder %s1093_s29, %s1093_s29 }
  0x2c   : > { %p1096_p10 = pnand %p1094_p9, %p1443_p13  ;;  %p1103_p12 = por %p1102_p6, %p1101_p2 }
  0x2e   : > { %p1097_p1 = pneg %p1096_p10 }
  0x30   : > { %p1104_p0 = pnand %p1103_p12, %p1097_p1 }
  0x32   : > { %1107 = shalt.err (!%p1104_p0)
}
  0x33   : > { %s1719_s7 = smov 128   ;;  %s1720_s9 = smov 8  }
  0x34   : > { %958 = dma.hbm_to_vmem [thread:$0]  (!%p1427_p11), %s1732_s2, 1024, %s1420_s30, [#allocation6], %s1719_s7, %s1719_s7, %s1720_s9  }
  0x35   : > { %s1734_s3 = sld [smem:[#allocation21_spill]] }
  0x3b   : > { %s1108_s15 = scalar_lea.hbm %s1734_s3, 1024 }
  0x3c   : > { %p1109_p1 = scmp.ne.s32.totalorder %s1734_s3, %s1108_s15  ;;  %p1115_p10 = scmp.lt.u32.totalorder %s1108_s15, %s1734_s3 }
  0x3e   : > { %p1111_p2 = pnand %p1109_p1, %p1443_p13 }
  0x40   : > { %p1112_p6 = pneg %p1111_p2 }
  0x42   : > { %p1117_p3 = pnand %p1115_p10, %p1112_p6 }
  0x44   : > { %1120 = shalt.err (!%p1117_p3)
}
  0x45   : > { %s1121_s30 = scalar_lea.vmem %s1431_s8, 1024  ;;  %p1129_p12 = scmp.lt.s32.totalorder %s1431_s8, %s1431_s8 }
  0x46   : > { %p1122_p5 = scmp.ne.s32.totalorder %s1431_s8, %s1121_s30  ;;  %p1130_p0 = scmp.lt.s32.totalorder %s1121_s30, %s1121_s30 }
  0x48   : > { %p1124_p7 = pnand %p1122_p5, %p1443_p13  ;;  %p1131_p1 = por %p1130_p0, %p1129_p12 }
  0x4a   : > { %p1125_p9 = pneg %p1124_p7 }
  0x4c   : > { %p1132_p2 = pnand %p1131_p1, %p1125_p9 }
  0x4e   : > { %1135 = shalt.err (!%p1132_p2)
}
  0x4f   : > { %961 = dma.hbm_to_vmem [thread:$0]  (!%p1427_p11), %s1734_s3, 1024, %s1431_s8, [#allocation9], %s1719_s7, %s1719_s7, %s1720_s9  }
  0x50   : > { %s1735_s4 = sld [smem:[#allocation22_spill]] }
  0x56   : > { %s1136_s14 = scalar_lea.hbm %s1735_s4, 1024 }
  0x57   : > { %p1137_p6 = scmp.ne.s32.totalorder %s1735_s4, %s1136_s14  ;;  %p1143_p5 = scmp.lt.u32.totalorder %s1136_s14, %s1735_s4 }
  0x59   : > { %p1139_p10 = pnand %p1137_p6, %p1443_p13 }
  0x5b   : > { %p1140_p3 = pneg %p1139_p10 }
  0x5d   : > { %p1145_p7 = pnand %p1143_p5, %p1140_p3 }
  0x5f   : > { %1148 = shalt.err (!%p1145_p7)
}
  0x60   : > { %s1149_s30 = scalar_lea.vmem %s232_s10, 1024  ;;  %p1157_p1 = scmp.lt.s32.totalorder %s232_s10, %s232_s10 }
  0x61   : > { %p1150_p9 = scmp.ne.s32.totalorder %s232_s10, %s1149_s30  ;;  %p1158_p2 = scmp.lt.s32.totalorder %s1149_s30, %s1149_s30 }
  0x63   : > { %p1152_p12 = pnand %p1150_p9, %p1443_p13  ;;  %p1159_p4 = por %p1158_p2, %p1157_p1 }
  0x65   : > { %p1153_p0 = pneg %p1152_p12 }
  0x67   : > { %p1160_p8 = pnand %p1159_p4, %p1153_p0 }
  0x69   : > { %1163 = shalt.err (!%p1160_p8)
}
  0x6a   : > { %s1326_s8 = smov 64   ;;  %s1327_s16 = smov 4  }
  0x6b   : > { %964 = dma.hbm_to_vmem [thread:$0]  (!%p1427_p11), %s1735_s4, 1024, %s232_s10, [#allocation9], %s1326_s8, %s1326_s8, %s1327_s16  }
  0x6c   : > { %s46_s12 = sadd.s32 1, %s1307_s20  ;;  %s37_s13 = sadd.s32 1, %s1315_s22 }
  0x6d   : > { %p53_p4 = scmp.ne.s32.totalorder %s1307_s20, %s1303_s19  ;;  %p39_p8 = scmp.ge.s32.totalorder %s37_s13, 2 }
  0x6e   : > { %p54_p13 = scmp.eq.s32.totalorder %s1319_s23, 0  ;;  %p1736_p6 = scmp.eq.s32.totalorder %s1397_s24, 1 }
  0x6f   : > { %p979_p3 = scmp.lt.s32.totalorder %s1319_s23, 2  ;;  %s1762_s13 = smov (%p39_p8, %s37_s13), 0 }
  0x70   : > { %p1519_p10 = por %p1736_p6, %p53_p4  ;;  %1738 = sst [smem:[#allocation18_spill]] %s1762_s13 }
  0x71   : > { %p55_p5 = por %p54_p13, %p53_p4  ;;  %s1527_s6 = sand.u32 1, %s1307_s20  }
  0x72   : > { %s1737_s14 = scalar_select %p1519_p10, 1, 0 }
  0x73   : > { %s41_s10 = ssub.s32 %s1315_s22, %s1762_s13  ;;  %s860_s15 = sshll.u32 %s1527_s6, 4 }
  0x74   : > { %p44_p11 = scmp.eq.s32.totalorder %s41_s10, 0  ;;  %s1718_s17 = smul.u32 384, %s1315_s22 }
  0x75   : > { %s1739_s0 = sld [smem:[#allocation19_spill]]  ;;  %s249_s16 = scalar_lea.vmem [#allocation2], %s860_s15 }
  0x76   : > { %s1534_s25 = scalar_select %p44_p11, %s1307_s20, %s46_s12  }
  0x77   : > { %s264_s27 = sshll.u32 %s249_s16, 4  ;;  %p1547_p7 = pnand %p979_p3, %p55_p5  ;;  %s1543_s27 = int_to_ptr.vmem [resolvable:$true] %s264_s27 }
  0x78   : > { %s862_s10 = sshll.u32 %s1527_s6, 3  ;;  %s246_s29 = scalar_lea.sflag [#allocation3], %s1527_s6 }
  0x79   : > { %p1166_p12 = pneg %p1547_p7 }
  0x7b   : > { %s1541_s8 = scalar_lea.hbm %s1739_s0, %s1718_s17  ;;  %s1169_s17 = scalar_lea.hbm %s1739_s0, 768 }
  0x7c   : > { %s1164_s30 = scalar_lea.hbm %s1541_s8, 256  ;;  %p1170_p2 = scmp.lt.u32.totalorder %s1541_s8, %s1739_s0 }
  0x7d   : > { %p1165_p9 = scmp.ne.s32.totalorder %s1541_s8, %s1164_s30  ;;  %p1171_p4 = scmp.lt.u32.totalorder %s1169_s17, %s1164_s30 }
  0x7e   : > { %p1173_p13 = scmp.lt.u32.totalorder %s1164_s30, %s1541_s8 }
  0x7f   : > { %p1167_p0 = pnand %p1166_p12, %p1165_p9  ;;  %p1172_p8 = por %p1171_p4, %p1170_p2 }
  0x81   : > { %p1168_p1 = pneg %p1167_p0  ;;  %p1174_p6 = por %p1173_p13, %p1172_p8 }
  0x83   : > { %p1175_p3 = pnand %p1174_p6, %p1168_p1 }
  0x85   : > { %1178 = shalt.err (!%p1175_p3)
}
  0x86   : > { %s1179_s12 = scalar_lea.vmem %s1543_s27, 256  ;;  %s1328_s15 = smov [#allocation2]  }
  0x87   : > { %p1180_p5 = scmp.ne.s32.totalorder %s1543_s27, %s1179_s12  ;;  %s1184_s16 = sshll.u32 %s1328_s15, 4  ;;  %s1185_s16 = int_to_ptr.vmem [resolvable:$false] %s1184_s16 }
  0x88   : > { %s1186_s7 = scalar_lea.vmem %s1185_s16, 512  ;;  %p1187_p0 = scmp.lt.s32.totalorder %s1543_s27, %s1185_s16 }
  0x89   : > { %p1182_p11 = pnand %p1180_p5, %p1166_p12  ;;  %p1188_p2 = scmp.lt.s32.totalorder %s1186_s7, %s1179_s12 }
  0x8b   : > { %p1183_p9 = pneg %p1182_p11  ;;  %p1189_p4 = por %p1188_p2, %p1187_p0 }
  0x8d   : > { %p1190_p8 = pnand %p1189_p4, %p1183_p9 }
  0x8f   : > { %1193 = shalt.err (!%p1190_p8)
}
  0x90   : > { %s1741_s9 = smov 8   ;;  %s1742_s17 = smov 128  }
  0x91   : > { %968 = dma.hbm_to_vmem [thread:$0]  (!%p1547_p7), %s1541_s8, 256, %s1543_s27, %s246_s29, %s1742_s17, %s1742_s17, %s1741_s9  }
  0x92   : > { %s1743_s30 = smul.u32 384, %s1315_s22  ;;  %s278_s0 = scalar_lea.vmem [#allocation5], %s862_s10 }
  0x93   : > { %s289_s2 = sshll.u32 %s278_s0, 4  ;;  %s1744_s3 = sand.u32 1, %s1319_s23   ;;  %s290_s2 = int_to_ptr.vmem [resolvable:$true] %s289_s2 }
  0x94   : > { %s757_s16 = scalar_lea.hbm %s1709_s1, %s1743_s30  ;;  %s275_s4 = scalar_lea.sflag [#allocation6], %s1744_s3 }
  0x95   : > { %s1589_s7 = scalar_lea.hbm %s757_s16, 256  ;;  %s1224_s13 = scalar_lea.hbm %s757_s16, 384 }
  0x96   : > { %p1195_p1 = scmp.ne.s32.totalorder %s1589_s7, %s1224_s13  ;;  %s1199_s29 = scalar_lea.hbm %s1709_s1, 768 }
  0x97   : > { %p1200_p3 = scmp.lt.u32.totalorder %s1589_s7, %s1709_s1  ;;  %p1201_p5 = scmp.lt.u32.totalorder %s1199_s29, %s1224_s13 }
  0x98   : > { %p1197_p13 = pnand %p1195_p1, %p1166_p12  ;;  %p1203_p9 = scmp.lt.u32.totalorder %s1224_s13, %s1589_s7 }
  0x99   : > { %p1202_p11 = por %p1201_p5, %p1200_p3 }
  0x9a   : > { %p1198_p6 = pneg %p1197_p13 }
  0x9b   : > { %p1204_p0 = por %p1203_p9, %p1202_p11 }
  0x9d   : > { %p1205_p2 = pnand %p1204_p0, %p1198_p6 }
  0x9f   : > { %1208 = shalt.err (!%p1205_p2)
}
  0xa0   : > { %s1209_s0 = scalar_lea.vmem %s290_s2, 128  ;;  %s1329_s3 = smov [#allocation5]  }
  0xa1   : > { %p1210_p4 = scmp.ne.s32.totalorder %s290_s2, %s1209_s0  ;;  %s1214_s10 = sshll.u32 %s1329_s3, 4  ;;  %s1215_s10 = int_to_ptr.vmem [resolvable:$false] %s1214_s10 }
  0xa2   : > { %s1216_s17 = scalar_lea.vmem %s1215_s10, 256  ;;  %p1217_p13 = scmp.lt.s32.totalorder %s290_s2, %s1215_s10 }
  0xa3   : > { %p1212_p8 = pnand %p1210_p4, %p1166_p12  ;;  %p1218_p10 = scmp.lt.s32.totalorder %s1216_s17, %s1209_s0 }
  0xa5   : > { %p1213_p1 = pneg %p1212_p8  ;;  %p1219_p3 = por %p1218_p10, %p1217_p13 }
  0xa7   : > { %p1220_p5 = pnand %p1219_p3, %p1213_p1 }
  0xa9   : > { %1223 = shalt.err (!%p1220_p5)
}
  0xaa   : > { %971 = dma.hbm_to_vmem [thread:$0]  (!%p1547_p7), %s1589_s7, 128, %s290_s2, %s275_s4  }
  0xab   : > { %p1745_p6 = scmp.ne.s32.totalorder %s1730_s28, 0 }
  0xac   : > { %s1616_s13 = sand.u32 (!%p1745_p6), 1, %s1303_s19   ;;  %p1746_p10 = scmp.ne.s32.totalorder (!%p1745_p6), %s1727_s26, 0 }
  0xad   : > { %298 = sbr.rel (%p1745_p6) target bundleno = 691 (0x2b3), region = 40  ;;  %s865_s30 = sshll.u32 (!%p1745_p6), %s1616_s13, 4 }
  0xae   : > { %s301_s15 = scalar_lea.sflag (!%p1745_p6), [#allocation3], %s1616_s13  ;;  %s304_s12 = scalar_lea.vmem (!%p1745_p6), [#allocation2], %s865_s30 }
  0xb4   : > { %1278 = dma.done.wait (%p1746_p10), %s301_s15, 256  }
  0xb5   : > { %1280 = vsyncadd (%p1746_p10), %s301_s15, 4294967040  ;;  %s309_s2 = sand.u32 1, %s1397_s24   ;;  %s866_s4 = sshll.u32 %s1616_s13, 3 }
  0xb6   : > { %s310_s28 = scalar_lea.sflag [#allocation6], %s309_s2  ;;  %s313_s11 = scalar_lea.vmem [#allocation5], %s866_s4 }
  0xb7   : > { %1282 = dma.done.wait (%p1746_p10), %s310_s28, 128  }
  0xb8   : > { %1284 = vsyncadd (%p1746_p10), %s310_s28, 4294967168  ;;  %p1747_p7 = scmp.eq.s32.totalorder %s1397_s24, 0 }
  0xba   : > { %1286 = dma.done.wait (%p1747_p7), [#allocation6], 1024   ;;  %p1748_p12 = pmov %p1747_p7 }
  0xbb   : > { %p1749_p11 = pmov %p1747_p7 }
  0xbc   : > { %1288 = vsyncadd (%p1748_p12), [#allocation6], 4294966272 }
  0xbd   : > { %1290 = dma.done.wait (%p1749_p11), [#allocation9], 2048   ;;  %p1750_p9 = pmov %p1747_p7 }
  0xbe   : > { %v1330_v0 = vmov 0   ;;  %v1331_v1 = vmov 0.0   ;;  %v1044_v2 = vld [vmem:[#allocation8 + $0x4] ss:$8 sps:$4 sm:$0xff]   ;;  %v1046_v3 = vld [vmem:[#allocation8] ss:$8 sps:$4 sm:$0xff]  }
  0xbf   : > { %1292 = vsyncadd (%p1750_p9), [#allocation9], 4294965248  ;;  %475 = vmatprep.mubr.bf16.mxu0 %v1330_v0  ;;  %912 = vmatprep.subr.bf16.mxu1 %v1331_v1  ;;  %v1047_v4 = vld [vmem:[#allocation8 + $0x14] ss:$8 sps:$4 sm:$0xff]   ;;  %v1049_v5 = vld [vmem:[#allocation8 + $0x10] ss:$8 sps:$4 sm:$0xff]  }
  0xc0   : > { %443 = vmatprep.subr.bf16.mxu0 %v1044_v2  ;;  %v1050_v6 = vld [vmem:[#allocation8 + $0x24] ss:$8 sps:$4 sm:$0xff]   ;;  %v1052_v7 = vld [vmem:[#allocation8 + $0x20] ss:$8 sps:$4 sm:$0xff]   ;;  %v368_v10 = vld [vmem:[%s313_s11] sm:$0xff]  ;;  %vm371_vm0 = vcmask 1046528  }
  0xc1   : > { %444 = vmatpush1.bf16.msra.mxu0 %v1046_v3  ;;  %v366_v8 = vld [vmem:[%s304_s12] sm:$0xff]  ;;  %v367_v9 = vld [vmem:[%s304_s12 + $0x8] sm:$0xff]  ;;  %v378_v14 = vrot.slane %v368_v10, 1  ;;  %vm439_vm1 = vcmask 523264   ;;  %vm1332_vm2 = vmmov 0   ;;  %s356_s24 = scalar_lea.vmem [#allocation11], %s865_s30 }
  0xc2   : > { %445 = vmatprep.subr.bf16.mxu0 %v1047_v4  ;;  %v372_v11 = vrot.slane %v366_v8, 1  ;;  %v1053_v12 = vld [vmem:[#allocation8 + $0x34] ss:$8 sps:$4 sm:$0xff]   ;;  %v373_v13 = vrot.slane %v367_v9, 1  ;;  %v1055_v15 = vld [vmem:[#allocation8 + $0x30] ss:$8 sps:$4 sm:$0xff]   ;;  %v381_v32 = vpack.c.bf16 %v367_v9, %v366_v8  ;;  %928 = vmatprep.mubr.msk.bf16.mxu1 %vm1332_vm2, %v1331_v1 }
  0xc3   : > { %v1058_v16 = vld [vmem:[#allocation7 + $0x4] ss:$8 sps:$4 sm:$0xff]   ;;  %v1056_v22 = vld [vmem:[#allocation7] ss:$8 sps:$4 sm:$0xff]   ;;  %v1061_v23 = vld [vmem:[#allocation7 + $0x14] ss:$8 sps:$4 sm:$0xff]  }
  0xc4   : > { %v374_v17 = vsel %vm371_vm0, %v372_v11, %v373_v13  ;;  %v380_v18 = vsel %vm371_vm0, %v373_v13, %v378_v14  ;;  %v1068_v19 = vld [vmem:[#allocation10] sm:$0xff]   ;;  %v1069_v21 = vld [vmem:[#allocation10 + $0x8] sm:$0xff]   ;;  %v1070_v24 = vld [vmem:[#allocation10 + $0x10] sm:$0xff]   ;;  %s711_s26 = sshll.u32 %s356_s24, 4  ;;  %s902_s16 = sshll.u32 %s1311_s21, 8  ;;  %s1654_s26 = int_to_ptr.vmem [resolvable:$true] %s711_s26 }
  0xc5   : > { %446 = vmatpush1.bf16.msra.mxu0 %v1049_v5  ;;  %v390_v20 = vpack.c.bf16 %v380_v18, %v374_v17  ;;  %913 = vmatpush3.bf16.msra.mxu1 %v1068_v19  ;;  %v1059_v25 = vld [vmem:[#allocation7 + $0x10] ss:$8 sps:$4 sm:$0xff]   ;;  %v1064_v26 = vld [vmem:[#allocation7 + $0x24] ss:$8 sps:$4 sm:$0xff]   ;;  %v1062_v28 = vld [vmem:[#allocation7 + $0x20] ss:$8 sps:$4 sm:$0xff]   ;;  %s1659_s27 = scalar_lea.hbm %s1713_s5, %s902_s16 }
  0xc6   : > { %447 = vmatprep.subr.bf16.mxu0 %v1050_v6  ;;  %914 = vmatprep.subr.bf16.mxu1 %v1331_v1  ;;  %v1071_v27 = vld [vmem:[#allocation10 + $0x18] sm:$0xff]   ;;  %v1072_v30 = vld [vmem:[#allocation10 + $0x20] sm:$0xff]   ;;  %v1073_v33 = vld [vmem:[#allocation10 + $0x28] sm:$0xff]   ;;  %s696_s29 = scalar_lea.sflag [#allocation4], %s1616_s13  ;;  %s1225_s9 = scalar_lea.vmem %s1654_s26, 256 }
  0xc7   : > { %v1067_v29 = vld [vmem:[#allocation7 + $0x34] ss:$8 sps:$4 sm:$0xff]   ;;  %v1065_v31 = vld [vmem:[#allocation7 + $0x30] ss:$8 sps:$4 sm:$0xff]   ;;  %p1226_p0 = scmp.ne.s32.totalorder %s1654_s26, %s1225_s9  ;;  %p1751_p2 = scmp.ne.s32.totalorder %s1737_s14, 0 }
  0xc8   : > { %v1074_v34 = vld [vmem:[#allocation10 + $0x30] sm:$0xff]   ;;  %v1075_v35 = vld [vmem:[#allocation10 + $0x38] sm:$0xff]   ;;  %s1333_s21 = smov [#allocation11]  }
  0xc9   : > { %448 = vmatpush1.bf16.msra.mxu0 %v1052_v7  ;;  %915 = vmatpush3.bf16.msra.mxu1 %v1069_v21  ;;  %p1227_p4 = pnand %p1226_p0, %p1751_p2  ;;  %s1229_s6 = sshll.u32 %s1333_s21, 4  ;;  %s1230_s6 = int_to_ptr.vmem [resolvable:$false] %s1229_s6 }
  0xca   : > { %449 = vmatprep.subr.bf16.mxu0 %v1053_v12  ;;  %916 = vmatprep.subr.bf16.mxu1 %v1331_v1  ;;  %s1231_s0 = scalar_lea.vmem %s1230_s6, 512  ;;  %p1232_p1 = scmp.lt.s32.totalorder %s1654_s26, %s1230_s6 }
  0xcb   : > { %p1228_p8 = pneg %p1227_p4  ;;  %p1233_p13 = scmp.lt.s32.totalorder %s1231_s0, %s1225_s9 }
  0xcd   : > { %450 = vmatpush1.bf16.msra.mxu0 %v1055_v15  ;;  %917 = vmatpush3.bf16.msra.mxu1 %v1070_v24  ;;  %p1234_p3 = por %p1233_p13, %p1232_p1 }
  0xce   : > { %529 = vmatprep.subr.bf16.mxu0 %v1058_v16  ;;  %918 = vmatprep.subr.bf16.mxu1 %v1331_v1 }
  0xcf   : > { %p1235_p5 = pnand %p1234_p3, %p1228_p8 }
  0xd0   : > { %879 = vmatmul.mubr.msk.bf16.vlgmr.msra.gmra.mrb[0].mxu0 %vm439_vm1, %v390_v20 }
  0xd1   : > { %530 = vmatpush1.bf16.msra.mxu0 %v1056_v22  ;;  %561 = vmatprep.mubr.bf16.mxu0 %v1330_v0 }
  0xd2   : > { %531 = vmatprep.subr.bf16.mxu0 %v1061_v23  ;;  %919 = vmatpush3.bf16.msra.mxu1 %v1071_v27 }
  0xd3   : > { %920 = vmatprep.subr.bf16.mxu1 %v1331_v1 }
  0xd5   : > { %532 = vmatpush1.bf16.msra.mxu0 %v1059_v25 }
  0xd6   : > { %533 = vmatprep.subr.bf16.mxu0 %v1064_v26  ;;  %921 = vmatpush3.bf16.msra.mxu1 %v1072_v30 }
  0xd7   : > { %922 = vmatprep.subr.bf16.mxu1 %v1331_v1 }
  0xd9   : > { %534 = vmatpush1.bf16.msra.mxu0 %v1062_v28 }
  0xda   : > { %535 = vmatprep.subr.bf16.mxu0 %v1067_v29  ;;  %923 = vmatpush3.bf16.msra.mxu1 %v1073_v33 }
  0xdb   : > { %924 = vmatprep.subr.bf16.mxu1 %v1331_v1 }
  0xdd   : > { %536 = vmatpush1.bf16.msra.mxu0 %v1065_v31 }
  0xde   : > { %925 = vmatpush3.bf16.msra.mxu1 %v1074_v34 }
  0xdf   : > { %926 = vmatprep.subr.bf16.mxu1 %v1331_v1 }
  0xe0   : > { %888 = vmatmul.mubr.msk.bf16.vlgmr.msra.gmra.mrb[0].mxu0 %vm439_vm1, %v381_v32 }
  0xe2   : > { %927 = vmatpush3.bf16.msra.mxu1 %v1075_v35 }
 0x1b3   : > { %v563_v36 = vpop.f32.mrb[0].mxu0 }
 0x1b4   : > { %v572_v37 = vmul.f32 %v563_v36, %v563_v36  ;;  %v565_v38 = vpop.f32.mrb[1].mxu0 }
 0x1b5   : > { %v574_v39 = vmul.f32 %v565_v38, %v565_v38  ;;  %v567_v40 = vpop.f32.mrb[2].mxu0 }
 0x1b6   : > { %v573_v41 = vmul.f32 %v567_v40, %v567_v40  ;;  %v569_v42 = vpop.f32.mrb[3].mxu0 }
 0x1b7   : > { %v576_v43 = vadd.f32 %v574_v39, %v572_v37  ;;  %v575_v44 = vmul.f32 %v569_v42, %v569_v42 }
 0x1b9   : > { %v577_v45 = vadd.f32 %v575_v44, %v573_v41 }
 0x1bb   : > { %v578_v46 = vpack.c.bf16 %v577_v45, %v576_v43 }
 0x1bd   : > { %929 = vmatmul.mubr.bf16.vlgmr.msra.gmra.mrb[0].mxu1 %v578_v46 }
 0x290   : > { %v677_v47 = vpop.f32.mrb[0].mxu1 }
 0x291   : > { %v684_v48 = vmax.f32 %v677_v47, 1e-05  ;;  %v930_v49 = vpop.f32.mrb[1].mxu1 }
 0x292   : > { %v680_v50 = vpop.f32.mrb[2].mxu1 }
 0x293   : > { %1076 = vlog2.f32 %v684_v48  ;;  %v685_v51 = vmax.f32 %v680_v50, 1e-05  ;;  %v931_v52 = vpop.f32.mrb[3].mxu1 }
 0x295   : > { %1078 = vlog2.f32 %v685_v51 }
 0x29d   : > { %v1077_v53 = vpop.eup %1076 }
 0x29e   : > { %v687_v54 = vmul.f32 0.6931472, %v1077_v53 }
 0x29f   : > { %v1079_v55 = vpop.eup %1078 }
 0x2a0   : > { %v691_v56 = vmul.f32 1.442695, %v687_v54  ;;  %v689_v57 = vmul.f32 0.6931472, %v1079_v55 }
 0x2a2   : > { %693 = vst [vmem:[%s356_s24] sm:$0xff] %v691_v56  ;;  %v692_v58 = vmul.f32 1.442695, %v689_v57 }
 0x2a4   : > { %694 = vst [vmem:[%s356_s24 + $0x8] sm:$0xff] %v692_v58 }
 0x2a5   : > { %1238 = shalt.err (!%p1235_p5)
}
 0x2a6   : > { %s1239_s3 = scalar_lea.hbm %s1659_s27, 256  ;;  %s1243_s30 = scalar_lea.hbm %s1713_s5, 512 }
 0x2a7   : > { %p1240_p6 = scmp.ne.s32.totalorder %s1659_s27, %s1239_s3  ;;  %p1244_p12 = scmp.lt.u32.totalorder %s1659_s27, %s1713_s5 }
 0x2a8   : > { %p1245_p11 = scmp.lt.u32.totalorder %s1243_s30, %s1239_s3  ;;  %p1247_p0 = scmp.lt.u32.totalorder %s1239_s3, %s1659_s27 }
 0x2a9   : > { %p1241_p10 = pnand %p1240_p6, %p1751_p2 }
 0x2aa   : > { %p1246_p9 = por %p1245_p11, %p1244_p12 }
 0x2ab   : > { %p1242_p7 = pneg %p1241_p10 }
 0x2ac   : > { %p1248_p4 = por %p1247_p0, %p1246_p9 }
 0x2ae   : > { %p1249_p8 = pnand %p1248_p4, %p1242_p7 }
 0x2b0   : > { %1252 = shalt.err (!%p1249_p8)
}
 0x2b1   : > { %s1334_s2 = smov 128   ;;  %s1335_s4 = smov 8  }
 0x2b2   : > { %953 = dma.vmem_to_hbm [thread:$0]  (%p1751_p2), %s1654_s26, 256, %s1659_s27, %s696_s29, %s1334_s2, %s1334_s2, %s1335_s4  }
 0x2b3 PF: > { %s1752_s28 = sld [smem:[#allocation17_spill]]  ;;  %s726_s11 = sand.u32 1, %s1299_s18  }
 0x2b4   : > { %p1754_p13 = scmp.ge.s32.totalorder %s1319_s23, 2  ;;  %s727_s24 = scalar_lea.sflag [#allocation4], %s726_s11 }
 0x2b9   : > { %p1753_p1 = scmp.ne.s32.totalorder %s1752_s28, 0 }
 0x2bb   : > { %p973_p3 = pnand %p1754_p13, %p1753_p1 }
 0x2bd   : > { %1294 = dma.done.wait (!%p973_p3), %s727_s24, 256  }
 0x2be   : > { %1296 = vsyncadd (!%p973_p3), %s727_s24, 4294967040  ;;  %s25_s23 = sadd.s32 1, %s1319_s23   ;;  %s1755_s14 = sld [smem:[#allocation18_spill]] }
 0x2bf   : > { %p22_p5 = scmp.ge.s32.totalorder %s25_s23, 4   ;;  %s1756_s18 = smov %s1303_s19 }
 0x2c0   : > { %s1757_s19 = smov %s1307_s20  ;;  %s1758_s20 = smov %s1534_s25 }
 0x2c1   : > { %s1759_s21 = smov %s1315_s22  ;;  %24 = sbr.rel (!%p22_p5) target bundleno = 14 (0xe), region = 110 }
 0x2c4   : > { %s1760_s22 = smov %s1755_s14 }
 0x2c8   :  { %732 = vsyncpa [#allocation3], 1 }
 0x2c9   :  { %734 = vsyncpa [#allocation3 + $0x1], 1 }
 0x2ca   :  { %735 = vsyncpa [#allocation6], 1 }
 0x2cb   :  { %737 = vsyncpa [#allocation6 + $0x1], 1 }
 0x2cc   :  { %738 = vsyncpa [#allocation9], 1 }
 0x2cd   :  { %739 = vsyncpa [#allocation4], 1 }
 0x2ce   :  { %741 = vsyncpa [#allocation4 + $0x1], 1 }

</bundles_post_ra>
